<compile_context>
chip_gen: v5e
topology: v5e:2x2
jax: 0.10.0
libtpu: 0.0.40
codegen_flags: <defaults>
</compile_context>

<pallas_src>
import jax
import jax.numpy as jnp
from jax.experimental import pallas as pl
from jax.experimental.pallas import tpu as pltpu

_LANE_CANDIDATES = (1024, 512, 256, 128)  # lane-dense widths (multiples of 128)


def _custom_activation_kernel(params_ref, x_ref, o_ref):
    # params_ref lives in SMEM: [alpha, beta, gamma] (float32 scalars).
    alpha = params_ref[0]
    beta = params_ref[1]
    gamma = params_ref[2]
    x = x_ref[...].astype(jnp.float32)
    y = x * jnp.where(x > 0, beta, alpha) + gamma
    o_ref[...] = y.astype(o_ref.dtype)


def _chip_tile_config():
    """Generation-gated max rows per tile + optional scoped-VMEM bump."""
    try:
        kind = jax.devices()[0].device_kind.lower()
    except Exception:
        kind = ""
    if "v7" in kind:
        # 3.2 TB/s HBM makes per-step pipeline overhead ~25% at 2 MiB tiles;
        # 8 MiB tiles cut it to ~7%.  32 MiB live fits 48 MiB scoped / 64 MiB
        # physical VMEM.
        return 2048, 48 * 1024 * 1024
    if "v6" in kind:
        # 4 MiB tiles (16 MiB live) fit the 32 MiB default scoped limit.
        return 1024, None
    # v5e (16 MiB default scoped limit) and anything unknown: 2 MiB tiles.
    return 512, None


def _pick_tm(rows, tm_max, sublane):
    """Rows per block: multiple of `sublane` (or the full dim).  When the
    whole tensor would fit one block, split into 2 grid steps so v7x's two
    TensorCores both get work."""
    if rows <= sublane:
        return rows                       # single full-dim block
    if rows <= tm_max:
        half = -(-rows // 2)              # ceil(rows / 2)
        return -(-half // sublane) * sublane
    return tm_max


def custom_activation(x, alpha, beta, gamma, *, donate=False):
    """Elementwise CustomActivation; x is any floating-point array (e.g. NCHW)."""
    orig_shape = x.shape
    total = x.size
    if total == 0:
        return x

    params = jnp.asarray([alpha, beta, gamma], dtype=jnp.float32)
    # Sub-32-bit dtypes pack 2x (or more) along sublanes -> align tm to 16.
    sublane = 8 if x.dtype == jnp.float32 else 16

    # Copy-free lane-dense 2-D view whenever total is a multiple of 128.
    lane = next((c for c in _LANE_CANDIDATES if total % c == 0), None)
    x_flat = x.reshape(-1)
    padded = False
    if lane is None:
        # TODO(synk): ragged total (<128 tail) falls back to a pad + slice,
        # which costs one extra HBM copy; rare for conv activations.
        lane = 128
        pad = (-total) % lane
        x_flat = jnp.pad(x_flat, (0, pad))
        padded = True
    rows = x_flat.size // lane
    x2d = x_flat.reshape(rows, lane)

    tm_max, vmem_limit = _chip_tile_config()
    tm = _pick_tm(rows, tm_max, sublane)
    grid = (pl.cdiv(rows, tm),)  # ragged last row-block is masked by Pallas

    out2d = pl.pallas_call(
        _custom_activation_kernel,
        out_shape=jax.ShapeDtypeStruct(x2d.shape, x2d.dtype),
        grid=grid,
        in_specs=[
            pl.BlockSpec(memory_space=pltpu.SMEM),       # scalar params
            pl.BlockSpec((tm, lane), lambda i: (i, 0)),  # tiled input
        ],
        out_specs=pl.BlockSpec((tm, lane), lambda i: (i, 0)),
        compiler_params=pltpu.CompilerParams(
            dimension_semantics=("parallel",),  # shard grid across TCs on v7x
            vmem_limit_bytes=vmem_limit,
        ),
        # Keep exactly one HBM read + one write when the caller donates x.
        input_output_aliases={1: 0} if donate else {},
    )(params, x2d)

    out_flat = out2d.reshape(-1)
    if padded:
        out_flat = out_flat[:total]
    return out_flat.reshape(orig_shape)


def custom_activation_ref(x, alpha, beta, gamma):
    pos = jnp.maximum(x, 0.0) * beta
    neg = -jnp.maximum(-x, 0.0) * alpha
    return pos + neg + gamma


if __name__ == "__main__":
    key = jax.random.PRNGKey(0)
    # Small NCHW input consistent with a conv-model activation.
    x = jax.random.normal(key, (2, 4, 16, 16), dtype=jnp.float32)

    # Parameter init matching the module's __init__: alpha=1, beta=1, gamma=0.
    out = custom_activation(x, 1.0, 1.0, 0.0)
    jax.block_until_ready(out)
    ref = custom_activation_ref(x, 1.0, 1.0, 0.0)
    assert out.shape == x.shape and out.dtype == x.dtype
    assert jnp.allclose(out, ref, atol=1e-6, rtol=1e-6)

    # Non-trivial learnable parameters (exercise alpha/beta/gamma paths).
    out2 = custom_activation(x, 0.25, 1.75, -0.5)
    jax.block_until_ready(out2)
    ref2 = custom_activation_ref(x, 0.25, 1.75, -0.5)
    assert jnp.allclose(out2, ref2, atol=1e-6, rtol=1e-6)

    # Odd total (not a multiple of 128): exercises the small fallback path.
    x3 = jax.random.normal(jax.random.PRNGKey(1), (2, 3, 7, 5), dtype=jnp.float32)
    out3 = custom_activation(x3, 0.5, 2.0, 0.1)
    jax.block_until_ready(out3)
    assert jnp.allclose(out3, custom_activation_ref(x3, 0.5, 2.0, 0.1),
                        atol=1e-6, rtol=1e-6)

    # bf16 path (compute in f32, store bf16) with loose tolerance.
    xb = x.astype(jnp.bfloat16)
    outb = custom_activation(xb, 0.25, 1.75, -0.5)
    jax.block_until_ready(outb)
    refb = custom_activation_ref(xb.astype(jnp.float32), 0.25, 1.75, -0.5)
    assert outb.dtype == jnp.bfloat16
    assert jnp.allclose(outb.astype(jnp.float32), refb, atol=3e-2, rtol=3e-2)

    print("KERNEL_OK")
</pallas_src>

<mosaic_0001>
module attributes {stable_mosaic.version = 11 : i64} {
  func.func @_custom_activation_kernel(%arg0: i32, %arg1: memref<3xf32, #tpu.memory_space<smem>>, %arg2: memref<2x1024xf32, #tpu.memory_space<vmem>>, %arg3: memref<2x1024xf32, #tpu.memory_space<vmem>>) attributes {dimension_semantics = [#tpu.dimension_semantics<parallel>], iteration_bounds = array<i64: 1>, scalar_prefetch = 0 : i64, scratch_operands = 0 : i64, tpu.core_type = #tpu.core_type<tc>, window_params = [{transform_indices = @transform_0, window_bounds = array<i64: 3>}, {transform_indices = @transform_1, window_bounds = array<i64: 2, 1024>}, {transform_indices = @transform_2, window_bounds = array<i64: 2, 1024>}]} {
    %c0 = arith.constant 0 : index
    %0 = memref.load %arg1[%c0] : memref<3xf32, #tpu.memory_space<smem>>
    %c1 = arith.constant 1 : index
    %1 = memref.load %arg1[%c1] : memref<3xf32, #tpu.memory_space<smem>>
    %c2 = arith.constant 2 : index
    %2 = memref.load %arg1[%c2] : memref<3xf32, #tpu.memory_space<smem>>
    %c0_0 = arith.constant 0 : index
    %c0_1 = arith.constant 0 : index
    %3 = vector.load %arg2[%c0_0, %c0_1] : memref<2x1024xf32, #tpu.memory_space<vmem>>, vector<2x1024xf32>
    %cst = arith.constant 0.000000e+00 : f32
    %4 = vector.broadcast %cst : f32 to vector<2x1024xf32>
    %5 = arith.cmpf ogt, %3, %4 : vector<2x1024xf32>
    %6 = vector.broadcast %1 : f32 to vector<2x1024xf32>
    %7 = vector.broadcast %0 : f32 to vector<2x1024xf32>
    %8 = arith.select %5, %6, %7 : vector<2x1024xi1>, vector<2x1024xf32>
    %9 = arith.mulf %3, %8 : vector<2x1024xf32>
    %10 = vector.broadcast %2 : f32 to vector<2x1024xf32>
    %11 = arith.addf %9, %10 : vector<2x1024xf32>
    %c0_2 = arith.constant 0 : index
    %c0_3 = arith.constant 0 : index
    %12 = vector.load %arg3[%c0_2, %c0_3] : memref<2x1024xf32, #tpu.memory_space<vmem>>, vector<2x1024xf32>
    tpu.vector_store %arg3[%c0_2, %c0_3], %11 {strides = array<i32>} : memref<2x1024xf32, #tpu.memory_space<vmem>>, vector<2x1024xf32>,
    return
  }
  func.func @transform_0(%arg0: i32) -> i32 {
    %c0_i32 = arith.constant 0 : i32
    %c0_i32_0 = arith.constant 0 : i32
    return %c0_i32 : i32
  }
  func.func @transform_1(%arg0: i32) -> (i32, i32) {
    %c0_i32 = arith.constant 0 : i32
    %c0_i32_0 = arith.constant 0 : i32
    return %arg0, %c0_i32 : i32, i32
  }
  func.func @transform_2(%arg0: i32) -> (i32, i32) {
    %c0_i32 = arith.constant 0 : i32
    %c0_i32_0 = arith.constant 0 : i32
    return %arg0, %c0_i32 : i32, i32
  }
}

</mosaic_0001>

<bundles_post_ra>
// kernel: tpu_custom_call.1
= control target key start
LH: loop header
LB: loop body
LE: loop exit
PB: predicated region body
PF: predicated region fallthrough
CT: control target
= control target key end

     0   :  { %7 = vsyncpa [#allocation5], 0  ;;  %s173_s0 = inlined_call_operand.hbm [shape: f32[3], index: 0, kind: input, shape index: {}]   ;;  %s174_s1 = inlined_call_operand.hbm [shape: f32[2,1024], index: 1, kind: input, shape index: {}]   ;;  %s175_s2 = inlined_call_operand.hbm [shape: f32[2,1024], index: 2, kind: output, shape index: {}]  }
   0x1   :  { %8 = vsyncpa [#allocation3], 0 }
   0x2   :  { %9 = vsyncpa [#allocation4], 0  ;;  %s15_s11 = sshll.u32 %s173_s0, 4  ;;  %s24_s14 = sshll.u32 %s174_s1, 4  ;;  %s16_s11 = int_to_ptr.hbm [resolvable:$true] %s15_s11  ;;  %s25_s14 = int_to_ptr.hbm [resolvable:$true] %s24_s14 }
   0x3   :  { %s146_s15 = smov [#allocation2]   ;;  %s147_s16 = smov [#allocation6]  }
   0x4   :  { %18 = dma.hbm_to_smem %s16_s11, 16, %s146_s15, [#allocation5]  }
   0x5   :  { %s26_s17 = sshll.u32 %s147_s16, 4  ;;  %s27_s17 = int_to_ptr.vmem [resolvable:$true] %s26_s17 }
   0x6   :  { %29 = dma.hbm_to_vmem [thread:$0]  %s25_s14, 256, %s27_s17, [#allocation3]  }
   0x7   :  { %140 = dma.done.wait [#allocation5], 16  }
   0x8   :  { %141 = vsyncadd [#allocation5], 4294967280 }
   0x9   :  { %142 = dma.done.wait [#allocation3], 256  }
   0xa   :  { %143 = vsyncadd [#allocation3], 4294967040 }
   0xb   :  { %38 = sfence }
   0xc   :  { %s39_s18 = sld [smem:[#allocation2]]  ;;  %v42_v0 = vld [vmem:[#allocation6] sm:$0xff]  ;;  %v43_v1 = vld [vmem:[#allocation6 + $0x8] sm:$0xff]  ;;  %s148_s1 = smov [#allocation7]  }
   0xd   :  { %s75_s19 = sld [smem:[#allocation2 + $0x1]]  ;;  %vm44_vm0 = vcmp.gt.f32.partialorder %v42_v0, 0.0  ;;  %vm45_vm1 = vcmp.gt.f32.partialorder %v43_v1, 0.0  ;;  %s62_s20 = sshll.u32 %s148_s1, 4  ;;  %s63_s20 = int_to_ptr.vmem [resolvable:$true] %s62_s20 }
   0xe   :  { %s76_s0 = sld [smem:[#allocation2 + $0x2]]  ;;  %s64_s23 = sshll.u32 %s175_s2, 4  ;;  %s65_s23 = int_to_ptr.hbm [resolvable:$true] %s64_s23 }
  0x12   :  { %v47_v2 = vstv %s39_s18 }
  0x13   :  { %v46_v3 = vstv %s75_s19 }
  0x14   :  { %v48_v4 = vsel %vm44_vm0, %v46_v3, %v47_v2  ;;  %v52_v5 = vstv %s76_s0  ;;  %v49_v6 = vsel %vm45_vm1, %v46_v3, %v47_v2 }
  0x15   :  { %v50_v7 = vmul.f32 %v48_v4, %v42_v0  ;;  %v51_v8 = vmul.f32 %v49_v6, %v43_v1 }
  0x17   :  { %v53_v9 = vadd.f32 %v52_v5, %v50_v7  ;;  %v54_v10 = vadd.f32 %v52_v5, %v51_v8 }
  0x19   :  { %55 = vst [vmem:[#allocation7] sm:$0xff] %v53_v9 }
  0x1a   :  { %56 = vst [vmem:[#allocation7 + $0x8] sm:$0xff] %v54_v10 }
  0x1b   :  { %67 = dma.vmem_to_hbm [thread:$0]  %s63_s20, 256, %s65_s23, [#allocation4]  }
  0x1c   :  { %144 = dma.done.wait [#allocation4], 256  }
  0x1d   :  { %145 = vsyncadd [#allocation4], 4294967040 }
  0x1e   :  { %72 = vsyncpa [#allocation3], 1 }
  0x1f   :  { %73 = vsyncpa [#allocation4], 1 }
  0x20   :  { %74 = vsyncpa [#allocation5], 1 }

</bundles_post_ra>
